<compile_context>
chip_gen: v7x
topology: tpu7x:2x2x1
jax: 0.10.0
libtpu: 0.0.40
codegen_flags: <defaults>
</compile_context>

<pallas_src>
import jax
import jax.numpy as jnp
from jax.experimental import pallas as pl
from jax.experimental.pallas import tpu as pltpu

# Static problem dims (ControllerBase fixes aDim=6, sDim=13).
K = 8            # number of sample rollouts (multiple of 8 -> sublane aligned)
TAU = 8          # prediction horizon
ADIM = 6         # action dim
SDIM = 13        # state dim
AF = TAU * ADIM  # 48  flattened action lanes
TS = TAU * SDIM  # 104 flattened state lanes
LANES = 128      # lane-dense padding width
PROWS = LANES + 8  # parameter slab rows: 128 (rollout operator) + 8 packed vector rows

# Packed vector rows inside the parameter-slab tail block (rows 128..135).
_T_S0 = 0    # s0 propagated states                  [TS]
_T_Q = 1     # state-cost lane weights (q,...,q,q+qf)[TS]
_T_ANW = 2   # a*n cost lane weights (1,...,1,2)     [AF]
_T_A = 3     # current action sequence A (flattened) [AF]
_T_ASH = 4   # A shifted left by ADIM (rolled A)     [AF-ADIM]


def mppi_control_kernel(nil_ref, params_ref, noise_ref, out_ref):
    neg_inv_lam = nil_ref[0]                       # scalar -1/lam from SMEM

    M = params_ref[0:LANES, :]                     # [128,128] rollout operator (zero-padded)
    tail = params_ref[LANES:PROWS, :]              # [8,128] packed vector rows
    s0row = tail[_T_S0:_T_S0 + 1, :]               # [1,128]
    qbig = tail[_T_Q:_T_Q + 1, :]                  # [1,128]
    anw = tail[_T_ANW:_T_ANW + 1, :]               # [1,128]
    A = tail[_T_A:_T_A + 1, :]                     # [1,128]
    A_sh = tail[_T_ASH:_T_ASH + 1, :]              # [1,128]

    noise = noise_ref[0:K, :]                      # [K,128]
    noise_sh = noise_ref[K:2 * K, :]               # [K,128] (noise shifted left by ADIM)

    # ---- rollout: all TAU states for all K samples in ONE MXU matmul ----
    act = A + noise                                # [K,128]  (A broadcast over samples)
    S = jnp.dot(act, M, preferred_element_type=jnp.float32) + s0row   # [K,128]

    # ---- cost: two lane reductions total (state cost + a*n cost incl. final term) ----
    cost = (jnp.sum(qbig * S * S, axis=-1, keepdims=True)
            + jnp.sum(anw * (A * noise), axis=-1, keepdims=True))     # [K,1]

    # ---- Update module: MPPI importance-sampling reweighting ----
    beta = jnp.min(cost, keepdims=True)            # (1,1)
    e = jnp.exp(neg_inv_lam * (cost - beta))       # [K,1]
    eta = jnp.sum(e, keepdims=True)                # (1,1)
    w = e * pl.reciprocal(eta, approx=True)        # [K,1]

    wn = jnp.sum(w * noise, axis=0, keepdims=True)        # [1,128] weighted noise
    wn_sh = jnp.sum(w * noise_sh, axis=0, keepdims=True)  # [1,128] weighted shifted noise

    # A update; rolled A_next built by linearity (shift precomputed on host inputs).
    A_new_row = A + wn                             # action = first ADIM lanes
    A_next_row = A_sh + wn_sh                      # roll(A_new,-1) with last block zeroed

    # Single lane-dense store: row0=A_new, row1=A_next, row2=eta, rest zero.
    row = jax.lax.broadcasted_iota(jnp.int32, (K, LANES), 0)
    out = jnp.where(row == 0, A_new_row,
          jnp.where(row == 1, A_next_row,
          jnp.where(row == 2, eta, 0.0)))
    out_ref[...] = out


def _pack_inputs(state_row, A_flat, noise2d, WsT, WaT, q, qf):
    """Precompute the linear rollout operator + cost lane weights and pack them
    (with A and the shifted A) into one lane-dense f32 slab; pack noise and the
    lane-shifted noise into a second slab.  M/qbig/anw depend only on the model
    and cost and could be cached across control steps."""
    f32 = jnp.float32
    # Powers of the (transposed) state-transition matrix: P[p] = WsT^p.
    P = [jnp.eye(SDIM, dtype=f32)]
    for _ in range(TAU):
        P.append(P[-1] @ WsT)

    # Rollout operator: column block t yields s_{t+1}; row block j carries act_j.
    rows = []
    for j in range(TAU):
        blocks = [WaT @ P[t - j] if t >= j else jnp.zeros((ADIM, SDIM), f32)
                  for t in range(TAU)]
        rows.append(jnp.concatenate(blocks, axis=1))
    M = jnp.concatenate(rows, axis=0)                                     # [AF, TS]

    s0row = jnp.concatenate([state_row @ P[t + 1] for t in range(TAU)], axis=1)  # [1,TS]
    qbig = jnp.concatenate([q] * (TAU - 1) + [q + qf], axis=1)                   # [1,TS]
    # Stage cost adds sum(a_t*n_t) every t; final cost re-adds the t=TAU-1 term
    # (matches the original rollout_cost semantics), hence weight 2 on the last block.
    anw = jnp.concatenate([jnp.ones((1, (TAU - 1) * ADIM), f32),
                           2.0 * jnp.ones((1, ADIM), f32)], axis=1)              # [1,AF]

    slab = jnp.zeros((PROWS, LANES), f32)
    slab = slab.at[0:AF, 0:TS].set(M)
    slab = slab.at[LANES + _T_S0, 0:TS].set(s0row[0])
    slab = slab.at[LANES + _T_Q, 0:TS].set(qbig[0])
    slab = slab.at[LANES + _T_ANW, 0:AF].set(anw[0])
    slab = slab.at[LANES + _T_A, 0:AF].set(A_flat[0])
    slab = slab.at[LANES + _T_ASH, 0:AF - ADIM].set(A_flat[0, ADIM:])

    noise_slab = jnp.zeros((2 * K, LANES), f32)
    noise_slab = noise_slab.at[0:K, 0:AF].set(noise2d)
    noise_slab = noise_slab.at[K:2 * K, 0:AF - ADIM].set(noise2d[:, ADIM:])
    return slab, noise_slab


def controller_forward(state_row, A_flat, noise2d, WsT, WaT, q, qf, lam):
    """One ControllerBase.forward() step. Returns (action [1,ADIM], A_next [1,AF], eta)."""
    slab, noise_slab = _pack_inputs(state_row, A_flat, noise2d, WsT, WaT, q, qf)
    neg_inv_lam = jnp.asarray([-1.0 / lam], dtype=jnp.float32)
    vmem = pl.BlockSpec(memory_space=pltpu.MemorySpace.VMEM)
    smem = pl.BlockSpec(memory_space=pltpu.MemorySpace.SMEM)
    out = pl.pallas_call(
        mppi_control_kernel,
        out_shape=jax.ShapeDtypeStruct((K, LANES), jnp.float32),
        in_specs=[smem, vmem, vmem],
        out_specs=vmem,
    )(neg_inv_lam, slab, noise_slab)
    action = out[0:1, 0:ADIM]
    A_next = out[1:2, 0:AF]
    eta = out[2, 0]
    return action, A_next, eta


def reference_forward(state_row, A_flat, noise2d, WsT, WaT, q, qf, lam):
    """Pure-JAX reference mirroring the torch semantics (sequential rollout)."""
    s = jnp.broadcast_to(state_row, (K, SDIM))
    cost = jnp.zeros((K, 1), jnp.float32)
    for t in range(TAU):
        a = A_flat[:, t * ADIM:(t + 1) * ADIM]
        n = noise2d[:, t * ADIM:(t + 1) * ADIM]
        act = a + n
        next_s = s @ WsT + act @ WaT
        cost = cost + (jnp.sum(q * next_s * next_s, -1, keepdims=True)
                       + jnp.sum(a * n, -1, keepdims=True))
        s = next_s
    a_l = A_flat[:, (TAU - 1) * ADIM:]
    n_l = noise2d[:, (TAU - 1) * ADIM:]
    cost = cost + (jnp.sum(qf * s * s, -1, keepdims=True)
                   + jnp.sum(a_l * n_l, -1, keepdims=True))
    beta = jnp.min(cost)
    e = jnp.exp(-(cost - beta) / lam)
    eta = jnp.sum(e)
    w = e / eta
    wn = jnp.sum(w * noise2d, axis=0, keepdims=True)
    A_new = A_flat + wn
    action = A_new[:, :ADIM]
    A_next = jnp.concatenate([A_new[:, ADIM:], jnp.zeros((1, ADIM), jnp.float32)], axis=1)
    return action, A_next, eta


if __name__ == "__main__":
    key = jax.random.PRNGKey(0)
    k_s, k_sig, k_n1, k_n2, k_ws, k_wa, k_q, k_qf = jax.random.split(key, 8)

    lam = 0.5
    upsilon = 1.0

    # state: [sDim, 1] as in the torch module; squeeze to a row vector.
    state = jax.random.normal(k_s, (SDIM, 1), dtype=jnp.float32)
    state_row = state.reshape(1, SDIM)

    # sigma: [aDim, aDim] system noise matrix; noise = (upsilon * sigma) @ n.
    sigma = 0.1 * jax.random.normal(k_sig, (ADIM, ADIM), dtype=jnp.float32)

    def make_noise(k_noise):
        n = jax.random.normal(k_noise, (K, TAU, ADIM, 1), dtype=jnp.float32)
        noise = jnp.einsum("ij,ktjl->ktil", upsilon * sigma, n)  # [K, TAU, ADIM, 1]
        return noise.reshape(K, TAU * ADIM)                      # layout: [k, tau*aDim]

    noise_step1 = make_noise(k_n1)
    noise_step2 = make_noise(k_n2)

    # A buffer initialized to zeros (as in __init__), flattened to [1, tau*aDim].
    A0 = jnp.zeros((1, AF), dtype=jnp.float32)

    # Deterministic synthetic model / cost parameters (stand-ins for external deps).
    WsT = (0.9 * jnp.eye(SDIM, dtype=jnp.float32)
           + 0.05 * jax.random.normal(k_ws, (SDIM, SDIM), dtype=jnp.float32))
    WaT = 0.1 * jax.random.normal(k_wa, (ADIM, SDIM), dtype=jnp.float32)
    q = jnp.abs(jax.random.normal(k_q, (1, SDIM), dtype=jnp.float32))
    qf = jnp.abs(jax.random.normal(k_qf, (1, SDIM), dtype=jnp.float32))

    # Two consecutive control steps (second one exercises a nonzero A buffer).
    act1, A1, eta1 = controller_forward(state_row, A0, noise_step1, WsT, WaT, q, qf, lam)
    act2, A2, eta2 = controller_forward(state_row, A1, noise_step2, WsT, WaT, q, qf, lam)
    jax.block_until_ready((act1, A1, eta1, act2, A2, eta2))

    r_act1, r_A1, r_eta1 = reference_forward(state_row, A0, noise_step1, WsT, WaT, q, qf, lam)
    r_act2, r_A2, r_eta2 = reference_forward(state_row, r_A1, noise_step2, WsT, WaT, q, qf, lam)

    ok = True
    for got, ref in ((act1, r_act1), (A1, r_A1), (eta1, r_eta1),
                     (act2, r_act2), (A2, r_A2), (eta2, r_eta2)):
        ok = ok and bool(jnp.allclose(got, ref, rtol=1e-2, atol=1e-2))
    if not ok:
        raise AssertionError("Pallas kernel does not match reference")

    print("KERNEL_OK")
</pallas_src>

<mosaic_0001>
module attributes {stable_mosaic.version = 11 : i64} {
  func.func @mppi_control_kernel(%arg0: memref<1xf32, #tpu.memory_space<smem>>, %arg1: memref<136x128xf32, #tpu.memory_space<vmem>>, %arg2: memref<16x128xf32, #tpu.memory_space<vmem>>, %arg3: memref<8x128xf32, #tpu.memory_space<vmem>>) attributes {dimension_semantics = [], scalar_prefetch = 0 : i64, scratch_operands = 0 : i64, tpu.core_type = #tpu.core_type<tc>} {
    %c0 = arith.constant 0 : index
    %0 = memref.load %arg0[%c0] : memref<1xf32, #tpu.memory_space<smem>>
    %c0_0 = arith.constant 0 : index
    %c0_1 = arith.constant 0 : index
    %1 = vector.load %arg1[%c0_0, %c0_1] : memref<136x128xf32, #tpu.memory_space<vmem>>, vector<128x128xf32>
    %c128 = arith.constant 128 : index
    %c0_2 = arith.constant 0 : index
    %2 = vector.load %arg1[%c128, %c0_2] : memref<136x128xf32, #tpu.memory_space<vmem>>, vector<8x128xf32>
    %3 = vector.extract_strided_slice %2 {offsets = [0, 0], sizes = [1, 128], strides = [1, 1]} : vector<8x128xf32> to vector<1x128xf32>
    %4 = vector.extract_strided_slice %2 {offsets = [1, 0], sizes = [1, 128], strides = [1, 1]} : vector<8x128xf32> to vector<1x128xf32>
    %5 = vector.extract_strided_slice %2 {offsets = [2, 0], sizes = [1, 128], strides = [1, 1]} : vector<8x128xf32> to vector<1x128xf32>
    %6 = vector.extract_strided_slice %2 {offsets = [3, 0], sizes = [1, 128], strides = [1, 1]} : vector<8x128xf32> to vector<1x128xf32>
    %7 = vector.extract_strided_slice %2 {offsets = [4, 0], sizes = [1, 128], strides = [1, 1]} : vector<8x128xf32> to vector<1x128xf32>
    %c0_3 = arith.constant 0 : index
    %c0_4 = arith.constant 0 : index
    %8 = vector.load %arg2[%c0_3, %c0_4] : memref<16x128xf32, #tpu.memory_space<vmem>>, vector<8x128xf32>
    %c8 = arith.constant 8 : index
    %c0_5 = arith.constant 0 : index
    %9 = vector.load %arg2[%c8, %c0_5] : memref<16x128xf32, #tpu.memory_space<vmem>>, vector<8x128xf32>
    %10 = vector.broadcast %6 : vector<1x128xf32> to vector<8x128xf32>
    %11 = arith.addf %10, %8 : vector<8x128xf32>
    %cst = arith.constant dense<0.000000e+00> : vector<8x128xf32>
    %12 = tpu.matmul %11, %1, %cst {dimension_numbers = #tpu.dot_dimension_numbers<[1], [0], [0], [1], [0, 0, 1, 1], [], []>} : vector<8x128xf32>, vector<128x128xf32>, vector<8x128xf32> -> vector<8x128xf32>
    %13 = vector.broadcast %3 : vector<1x128xf32> to vector<8x128xf32>
    %14 = arith.addf %12, %13 : vector<8x128xf32>
    %15 = vector.broadcast %4 : vector<1x128xf32> to vector<8x128xf32>
    %16 = arith.mulf %15, %14 : vector<8x128xf32>
    %17 = arith.mulf %16, %14 : vector<8x128xf32>
    %cst_6 = arith.constant dense<0.000000e+00> : vector<8xf32>
    %18 = vector.multi_reduction <add>, %17, %cst_6 [1] : vector<8x128xf32> to vector<8xf32>
    %19 = vector.shape_cast %18 : vector<8xf32> to vector<8x1xf32>
    %20 = vector.broadcast %6 : vector<1x128xf32> to vector<8x128xf32>
    %21 = arith.mulf %20, %8 : vector<8x128xf32>
    %22 = vector.broadcast %5 : vector<1x128xf32> to vector<8x128xf32>
    %23 = arith.mulf %22, %21 : vector<8x128xf32>
    %cst_7 = arith.constant dense<0.000000e+00> : vector<8xf32>
    %24 = vector.multi_reduction <add>, %23, %cst_7 [1] : vector<8x128xf32> to vector<8xf32>
    %25 = vector.shape_cast %24 : vector<8xf32> to vector<8x1xf32>
    %26 = arith.addf %19, %25 : vector<8x1xf32>
    %27 = vector.shape_cast %26 : vector<8x1xf32> to vector<1x8x1xf32>
    %cst_8 = arith.constant dense<0x7F800000> : vector<1xf32>
    %28 = vector.multi_reduction <minimumf>, %27, %cst_8 [1, 2] : vector<1x8x1xf32> to vector<1xf32>
    %29 = vector.shape_cast %28 : vector<1xf32> to vector<1x1x1xf32>
    %30 = vector.extract %29[0, 0, 0] : f32 from vector<1x1x1xf32>
    %31 = vector.broadcast %30 : f32 to vector<1x1xf32>
    %32 = vector.broadcast %31 : vector<1x1xf32> to vector<8x1xf32>
    %33 = arith.subf %26, %32 : vector<8x1xf32>
    %34 = vector.broadcast %0 : f32 to vector<8x1xf32>
    %35 = arith.mulf %34, %33 : vector<8x1xf32>
    %36 = math.exp %35 : vector<8x1xf32>
    %37 = vector.shape_cast %36 : vector<8x1xf32> to vector<1x8x1xf32>
    %cst_9 = arith.constant dense<0.000000e+00> : vector<1xf32>
    %38 = vector.multi_reduction <add>, %37, %cst_9 [1, 2] : vector<1x8x1xf32> to vector<1xf32>
    %39 = vector.shape_cast %38 : vector<1xf32> to vector<1x1x1xf32>
    %40 = vector.extract %39[0, 0, 0] : f32 from vector<1x1x1xf32>
    %41 = vector.broadcast %40 : f32 to vector<1x1xf32>
    %42 = tpu.reciprocal %41 {approx = true} : vector<1x1xf32> -> vector<1x1xf32>
    %43 = vector.broadcast %42 : vector<1x1xf32> to vector<8x1xf32>
    %44 = arith.mulf %36, %43 : vector<8x1xf32>
    %45 = vector.broadcast %44 : vector<8x1xf32> to vector<8x128xf32>
    %46 = arith.mulf %45, %8 : vector<8x128xf32>
    %cst_10 = arith.constant dense<0.000000e+00> : vector<128xf32>
    %47 = vector.multi_reduction <add>, %46, %cst_10 [0] : vector<8x128xf32> to vector<128xf32>
    %48 = vector.shape_cast %47 : vector<128xf32> to vector<1x128xf32>
    %49 = vector.broadcast %44 : vector<8x1xf32> to vector<8x128xf32>
    %50 = arith.mulf %49, %9 : vector<8x128xf32>
    %cst_11 = arith.constant dense<0.000000e+00> : vector<128xf32>
    %51 = vector.multi_reduction <add>, %50, %cst_11 [0] : vector<8x128xf32> to vector<128xf32>
    %52 = vector.shape_cast %51 : vector<128xf32> to vector<1x128xf32>
    %53 = arith.addf %6, %48 : vector<1x128xf32>
    %54 = arith.addf %7, %52 : vector<1x128xf32>
    %55 = tpu.iota {dimensions = array<i32: 0>} : vector<8x128xi32>
    %c0_i32 = arith.constant 0 : i32
    %56 = vector.broadcast %c0_i32 : i32 to vector<8x128xi32>
    %57 = arith.cmpi eq, %55, %56 : vector<8x128xi32>
    %c1_i32 = arith.constant 1 : i32
    %58 = vector.broadcast %c1_i32 : i32 to vector<8x128xi32>
    %59 = arith.cmpi eq, %55, %58 : vector<8x128xi32>
    %c2_i32 = arith.constant 2 : i32
    %60 = vector.broadcast %c2_i32 : i32 to vector<8x128xi32>
    %61 = arith.cmpi eq, %55, %60 : vector<8x128xi32>
    %cst_12 = arith.constant 0.000000e+00 : f32
    %62 = vector.shape_cast %41 : vector<1x1xf32> to vector<1x1xf32>
    %63 = vector.broadcast %62 : vector<1x1xf32> to vector<8x128xf32>
    %64 = vector.broadcast %cst_12 : f32 to vector<8x128xf32>
    %65 = arith.select %61, %63, %64 : vector<8x128xi1>, vector<8x128xf32>
    %66 = vector.shape_cast %54 : vector<1x128xf32> to vector<1x128xf32>
    %67 = vector.broadcast %66 : vector<1x128xf32> to vector<8x128xf32>
    %68 = arith.select %59, %67, %65 : vector<8x128xi1>, vector<8x128xf32>
    %69 = vector.shape_cast %53 : vector<1x128xf32> to vector<1x128xf32>
    %70 = vector.broadcast %69 : vector<1x128xf32> to vector<8x128xf32>
    %71 = arith.select %57, %70, %68 : vector<8x128xi1>, vector<8x128xf32>
    %c0_13 = arith.constant 0 : index
    %c0_14 = arith.constant 0 : index
    %72 = vector.load %arg3[%c0_13, %c0_14] : memref<8x128xf32, #tpu.memory_space<vmem>>, vector<8x128xf32>
    tpu.vector_store %arg3[%c0_13, %c0_14], %71 {strides = array<i32>} : memref<8x128xf32, #tpu.memory_space<vmem>>, vector<8x128xf32>,
    return
  }
}

</mosaic_0001>

<bundles_post_ra>
// kernel: tpu_custom_call.1
= control target key start
LH: loop header
LB: loop body
LE: loop exit
PB: predicated region body
PF: predicated region fallthrough
CT: control target
= control target key end

     0   :  { %9 = vsyncpa [#allocation4], 0  ;;  %s489_s0 = inlined_call_operand.<no memory space> [shape: f32[1], index: 0, kind: input, shape index: {}]   ;;  %s490_s1 = inlined_call_operand.hbm [shape: f32[136,128], index: 1, kind: input, shape index: {}]   ;;  %s491_s2 = inlined_call_operand.hbm [shape: f32[16,128], index: 2, kind: input, shape index: {}]   ;;  %s492_s3 = inlined_call_operand.hbm [shape: f32[8,128], index: 3, kind: output, shape index: {}]  }
   0x1   :  { %10 = vsyncpa [#allocation7], 0 }
   0x2   :  { %11 = vsyncpa [#allocation5], 0  ;;  %s400_s12 = smov [#allocation3]   ;;  %s328_s16 = scalar_lea.hbm %s490_s1, 2176 }
   0x3   :  { %s19_s13 = sshll.u32 %s400_s12, 4  ;;  %p329_p0 = scmp.ne.s32.totalorder %s490_s1, %s328_s16  ;;  %s20_s13 = int_to_ptr.vmem [resolvable:$true] %s19_s13 }
   0x4   :  { %p332_p1 = scmp.lt.u32.totalorder %s328_s16, %s490_s1 }
   0x6   :  { %p334_p2 = pnand %p332_p1, %p329_p0 }
   0x8   :  { %337 = shalt.err (!%p334_p2)
}
   0x9   :  { %s338_s21 = scalar_lea.vmem %s20_s13, 2176  ;;  %p343_p4 = scmp.lt.s32.totalorder %s20_s13, %s20_s13 }
   0xa   :  { %p339_p3 = scmp.ne.s32.totalorder %s20_s13, %s338_s21  ;;  %p344_p5 = scmp.lt.s32.totalorder %s338_s21, %s338_s21 }
   0xc   :  { %p345_p6 = por %p344_p5, %p343_p4 }
   0xe   :  { %p346_p7 = pnand %p345_p6, %p339_p3 }
  0x10   :  { %349 = shalt.err (!%p346_p7)
}
  0x11   :  { %s401_s22 = smov 128   ;;  %s402_s23 = smov 8  }
  0x12   :  { %25 = dma.hbm_to_vmem [thread:$0]  %s490_s1, 2176, %s20_s13, [#allocation4], %s401_s22, %s401_s22, %s402_s23  }
  0x13   :  { %s403_s26 = smov [#allocation6]   ;;  %s350_s30 = scalar_lea.hbm %s491_s2, 256 }
  0x14   :  { %s31_s27 = sshll.u32 %s403_s26, 4  ;;  %p351_p8 = scmp.ne.s32.totalorder %s491_s2, %s350_s30  ;;  %s32_s27 = int_to_ptr.vmem [resolvable:$true] %s31_s27 }
  0x15   :  { %p354_p9 = scmp.lt.u32.totalorder %s350_s30, %s491_s2 }
  0x17   :  { %p356_p10 = pnand %p354_p9, %p351_p8 }
  0x19   :  { %359 = shalt.err (!%p356_p10)
}
  0x1a   :  { %s360_s8 = scalar_lea.vmem %s32_s27, 256  ;;  %p365_p12 = scmp.lt.s32.totalorder %s32_s27, %s32_s27 }
  0x1b   :  { %p361_p11 = scmp.ne.s32.totalorder %s32_s27, %s360_s8  ;;  %p366_p13 = scmp.lt.s32.totalorder %s360_s8, %s360_s8 }
  0x1d   :  { %p367_p0 = por %p366_p13, %p365_p12 }
  0x1f   :  { %p368_p1 = pnand %p367_p0, %p361_p11 }
  0x21   :  { %371 = shalt.err (!%p368_p1)
}
  0x22   :  { %37 = dma.hbm_to_vmem [thread:$0]  %s491_s2, 256, %s32_s27, [#allocation7], %s401_s22, %s401_s22, %s402_s23  }
  0x23   :  { %394 = dma.done.wait [#allocation4], 2176  }
  0x24   :  { %395 = vsyncadd [#allocation4], 4294965120 }
  0x25   :  { %396 = dma.done.wait [#allocation7], 256  }
  0x26   :  { %397 = vsyncadd [#allocation7], 4294967040  ;;  %v404_v0 = vmov 0.0|0.0   ;;  %vm405_vm0 = vmmov 0   ;;  %v406_v1 = vmov 0.0   ;;  %v45_v2 = vld [vmem:[#allocation3] sm:$0xff]  ;;  %v64_v16 = vlaneseq }
  0x27   :  { %288 = vmatprep.subr.bf16.mxu0 %v404_v0  ;;  %285 = vmatprep.mubr.msk.f32.mxu0 %vm405_vm0, %v406_v1  ;;  %v46_v3 = vld [vmem:[#allocation3 + $0x8] sm:$0xff]  ;;  %v47_v4 = vld [vmem:[#allocation3 + $0x10] sm:$0xff]  ;;  %v48_v6 = vld [vmem:[#allocation3 + $0x18] sm:$0xff]  ;;  %v169_v56 = vstv %s489_s0  ;;  %vm173_vm1 = vcmask 7168   ;;  %s407_s0 = smov [#allocation8]  }
  0x28   :  { %v289_v5 = vpack.c.bf16 %v46_v3, %v45_v2  ;;  %v292_v7 = vpack.c.bf16 %v48_v6, %v47_v4  ;;  %v49_v8 = vld [vmem:[#allocation3 + $0x20] sm:$0xff]  ;;  %v50_v9 = vld [vmem:[#allocation3 + $0x28] sm:$0xff]  ;;  %v51_v11 = vld [vmem:[#allocation3 + $0x30] sm:$0xff]  ;;  %v452_v20 = vshrl.u32 %v64_v16, 7  ;;  %s226_s13 = sshll.u32 %s407_s0, 4  ;;  %s227_s13 = int_to_ptr.vmem [resolvable:$true] %s226_s13 }
  0x29   :  { %v295_v10 = vpack.c.bf16 %v50_v9, %v49_v8  ;;  %v52_v12 = vld [vmem:[#allocation3 + $0x38] sm:$0xff]  ;;  %v53_v14 = vld [vmem:[#allocation3 + $0x40] sm:$0xff]  ;;  %v54_v15 = vld [vmem:[#allocation3 + $0x48] sm:$0xff]  ;;  %s372_s14 = scalar_lea.vmem %s227_s13, 128  ;;  %p377_p3 = scmp.lt.s32.totalorder %s227_s13, %s227_s13 }
  0x2a   :  { %290 = vmatpush3.bf16.msra.mxu0 %v289_v5  ;;  %v298_v13 = vpack.c.bf16 %v52_v12, %v51_v11  ;;  %v301_v17 = vpack.c.bf16 %v54_v15, %v53_v14  ;;  %v55_v18 = vld [vmem:[#allocation3 + $0x50] sm:$0xff]  ;;  %v56_v19 = vld [vmem:[#allocation3 + $0x58] sm:$0xff]  ;;  %v57_v22 = vld [vmem:[#allocation3 + $0x60] sm:$0xff]  ;;  %v66_v24 = vsub.s32 3, %v452_v20  ;;  %v71_v33 = vsub.s32 0, %v452_v20  ;;  %p373_p2 = scmp.ne.s32.totalorder %s227_s13, %s372_s14  ;;  %p378_p4 = scmp.lt.s32.totalorder %s372_s14, %s372_s14 }
  0x2b   :  { %291 = vmatprep.subr.bf16.mxu0 %v404_v0  ;;  %v304_v21 = vpack.c.bf16 %v56_v19, %v55_v18  ;;  %v58_v23 = vld [vmem:[#allocation3 + $0x68] sm:$0xff]  ;;  %v455_v26 = vld [vmem:[#allocation3 + $0x80] sm:$0xff]  ;;  %v59_v27 = vld [vmem:[#allocation3 + $0x70] sm:$0xff]  ;;  %v145_v34 = vsub.s32 1, %v452_v20  ;;  %v154_v37 = vsub.s32 2, %v452_v20  ;;  %vm207_vm2 = vcmp.eq.s32.totalorder %v452_v20, 2 }
  0x2c   :  { %v307_v25 = vpack.c.bf16 %v58_v23, %v57_v22  ;;  %v60_v28 = vld [vmem:[#allocation3 + $0x78] sm:$0xff]  ;;  %v67_v29 = vrot.slane %v455_v26, %v66_v24  ;;  %v62_v31 = vld [vmem:[#allocation6] sm:$0xff]  ;;  %v72_v35 = vrot.slane %v455_v26, %v71_v33  ;;  %v211_v23 = vsub.s32 4, %v452_v20  ;;  %p379_p5 = por %p378_p4, %p377_p3 }
  0x2d   :  { %v310_v30 = vpack.c.bf16 %v60_v28, %v59_v27  ;;  %v146_v36 = vrot.slane %v455_v26, %v145_v34  ;;  %v155_v43 = vrot.slane %v455_v26, %v154_v37  ;;  %vm206_vm3 = vcmp.eq.s32.totalorder %v452_v20, 1 }
  0x2e   :  { %293 = vmatpush3.bf16.msra.mxu0 %v292_v7  ;;  %v68_v32 = vadd.f32 %v67_v29, %v62_v31  ;;  %v151_v42 = vmul.f32 %v67_v29, %v62_v31  ;;  %v63_v7 = vld [vmem:[#allocation6 + $0x8] sm:$0xff]  ;;  %vm205_vm4 = vcmp.eq.s32.totalorder %v452_v20, 0  ;;  %p380_p6 = pnand %p379_p5, %p373_p2 }
  0x2f   :  { %294 = vmatprep.subr.bf16.mxu0 %v404_v0 }
  0x30   :  { %v156_v45 = vmul.f32 %v155_v43, %v151_v42 }
  0x32   :  { %296 = vmatpush3.bf16.msra.mxu0 %v295_v10 }
  0x33   :  { %297 = vmatprep.subr.bf16.mxu0 %v404_v0 }
  0x36   :  { %299 = vmatpush3.bf16.msra.mxu0 %v298_v13 }
  0x37   :  { %300 = vmatprep.subr.bf16.mxu0 %v404_v0 }
  0x3a   :  { %302 = vmatpush3.bf16.msra.mxu0 %v301_v17 }
  0x3b   :  { %303 = vmatprep.subr.bf16.mxu0 %v404_v0 }
  0x3e   :  { %305 = vmatpush3.bf16.msra.mxu0 %v304_v21 }
  0x3f   :  { %306 = vmatprep.subr.bf16.mxu0 %v404_v0 }
  0x42   :  { %308 = vmatpush3.bf16.msra.mxu0 %v307_v25 }
  0x43   :  { %309 = vmatprep.subr.bf16.mxu0 %v404_v0 }
  0x46   :  { %311 = vmatpush3.bf16.msra.mxu0 %v310_v30 }
  0x49   :  { %286 = vmatmul.mubr.f32.vlgmr.msra.gmra.mrb[0].mxu0 %v68_v32 }
 0x11c   :  { %v139_v38 = vpop.f32.mrb[0].mxu0 }
 0x11d   :  { %v140_v39 = vadd.f32 %v139_v38, %v72_v35  ;;  %v287_v40 = vpop.f32.mrb[1].mxu0 }
 0x11f   :  { %v147_v41 = vmul.f32 %v146_v36, %v140_v39 }
 0x121   :  { %v148_v44 = vmul.f32 %v147_v41, %v140_v39 }
 0x123   :  { %149 = vadd.xlane.f32.xlu0 %v148_v44 }
 0x127   :  { %157 = vadd.xlane.f32.xlu0 %v156_v45 }
 0x1b0   :  { %v150_v46 = vpop.xlane.xlu0 %149 }
 0x1b4   :  { %v158_v47 = vpop.xlane.xlu0 %157 }
 0x1b5   :  { %v159_v48 = vadd.f32 %v158_v47, %v150_v46 }
 0x1b7   :  { %v160_v49 = vrot.slane %v159_v48, 4 }
 0x1b9   :  { %v161_v50 = vmin.f32 %v159_v48, %v160_v49 }
 0x1bb   :  { %v162_v51 = vrot.slane %v161_v50, 2 }
 0x1bd   :  { %v163_v52 = vmin.f32 %v161_v50, %v162_v51 }
 0x1bf   :  { %v164_v53 = vrot.slane %v163_v52, 1 }
 0x1c1   :  { %v165_v54 = vmin.f32 %v163_v52, %v164_v53 }
 0x1c3   :  { %312 = vpush %v165_v54 }
 0x1f4   :  { %s313_s2 = spop %312 }
 0x1f5   :  { %v167_v55 = vstv %s313_s2 }
 0x1f6   :  { %v168_v57 = vsub.f32 %v159_v48, %v167_v55 }
 0x1f8   :  { %v170_v58 = vmul.f32 %v169_v56, %v168_v57 }
 0x1fa   :  { %v171_v59 = vmul.f32 1.442695, %v170_v58 }
 0x1fc   :  { %324 = vpow2.f32 %v171_v59 }
 0x206   :  { %v325_v60 = vpop.eup %324 }
 0x207   :  { %v174_v61 = vsel %vm173_vm1, %v325_v60, 0.0 }
 0x208   :  { %175 = vadd.xlane.f32.xlu1 %v174_v61 }
 0x295   :  { %v176_v62 = vpop.xlane.xlu1 %175 }
 0x296   :  { %v177_v63 = vrot.slane %v176_v62, 4 }
 0x298   :  { %v178_v0 = vadd.f32 %v177_v63, %v176_v62 }
 0x29a   :  { %v179_v1 = vrot.slane %v178_v0, 2 }
 0x29c   :  { %v180_v2 = vadd.f32 %v179_v1, %v178_v0 }
 0x29e   :  { %v181_v3 = vrot.slane %v180_v2, 1 }
 0x2a0   :  { %v182_v4 = vadd.f32 %v181_v3, %v180_v2 }
 0x2a2   :  { %314 = vpush %v182_v4 }
 0x2d3   :  { %s315_s12 = spop %314 }
 0x2d4   :  { %v184_v5 = vstv %s315_s12 }
 0x2d5   :  { %326 = vrcp.f32 %v184_v5 }
 0x2df   :  { %v327_v6 = vpop.eup %326 }
 0x2e0   :  { %v186_v8 = vmul.f32 %v327_v6, %v325_v60 }
 0x2e2   :  { %v187_v9 = vmul.f32 %v186_v8, %v62_v31  ;;  %v194_v10 = vmul.f32 %v186_v8, %v63_v7  ;;  %v208_v31 = vsel %vm207_vm2, %v184_v5, 0.0 }
 0x2e4   :  { %v188_v11 = vrot.slane %v187_v9, 4  ;;  %v195_v12 = vrot.slane %v194_v10, 4 }
 0x2e6   :  { %v196_v13 = vadd.f32 %v195_v12, %v194_v10  ;;  %v189_v14 = vadd.f32 %v188_v11, %v187_v9 }
 0x2e8   :  { %v197_v15 = vrot.slane %v196_v13, 2  ;;  %v190_v16 = vrot.slane %v189_v14, 2 }
 0x2ea   :  { %v198_v17 = vadd.f32 %v197_v15, %v196_v13  ;;  %v191_v18 = vadd.f32 %v190_v16, %v189_v14 }
 0x2ec   :  { %v199_v19 = vrot.slane %v198_v17, 1  ;;  %v192_v21 = vrot.slane %v191_v18, 1 }
 0x2ee   :  { %v200_v22 = vadd.f32 %v199_v19, %v198_v17  ;;  %v193_v25 = vadd.f32 %v192_v21, %v191_v18 }
 0x2f0   :  { %v202_v27 = vadd.f32 %v200_v22, %v455_v26  ;;  %v201_v28 = vadd.f32 %v193_v25, %v455_v26 }
 0x2f2   :  { %v212_v29 = vrot.slane %v202_v27, %v211_v23  ;;  %v217_v30 = vrot.slane %v201_v28, %v66_v24 }
 0x2f4   :  { %v213_v32 = vsel %vm206_vm3, %v212_v29, %v208_v31 }
 0x2f5   :  { %v218_v33 = vsel %vm205_vm4, %v217_v30, %v213_v32 }
 0x2f6   :  { %219 = vst [vmem:[#allocation8] sm:$0xff] %v218_v33 }
 0x2f7   :  { %383 = shalt.err (!%p380_p6)
}
 0x2f8   :  { %s384_s17 = scalar_lea.hbm %s492_s3, 128 }
 0x2f9   :  { %p385_p7 = scmp.ne.s32.totalorder %s492_s3, %s384_s17  ;;  %p388_p8 = scmp.lt.u32.totalorder %s384_s17, %s492_s3 }
 0x2fb   :  { %p390_p9 = pnand %p388_p8, %p385_p7 }
 0x2fd   :  { %393 = shalt.err (!%p390_p9)
}
 0x2fe   :  { %229 = dma.vmem_to_hbm [thread:$0]  %s227_s13, 128, %s492_s3, [#allocation5]  }
 0x2ff   :  { %398 = dma.done.wait [#allocation5], 128  }
 0x300   :  { %399 = vsyncadd [#allocation5], 4294967168 }
 0x301   :  { %233 = vsyncpa [#allocation4], 1 }
 0x302   :  { %234 = vsyncpa [#allocation7], 1 }
 0x303   :  { %235 = vsyncpa [#allocation5], 1 }

</bundles_post_ra>
